<compile_context>
chip_gen: v6e
topology: v6e:2x2x1
jax: 0.10.0
libtpu: 0.0.40
codegen_flags: <defaults>
</compile_context>

<pallas_src>
import numpy as np
import jax
import jax.numpy as jnp
from jax.experimental import pallas as pl
from jax.experimental.pallas import tpu as pltpu


# --------------------------------------------------------------------------
# Pallas kernel: one-hot build -> conv-as-matmul -> linear -> output -> select
# --------------------------------------------------------------------------
def _smartcnn_kernel(e_ref, flip_ref, w1_ref, b1_ref, w2_ref, b2_ref,
                     w3_ref, b3_ref, o_ref):
    e = e_ref[...]                                             # (TB,16) int32, values 0..10
    # Build the (TB, 176) one-hot activation in VMEM: column c*16+s is 1 iff
    # the exponent at cell s equals c.  (The constant all-ones mask channel of
    # the original preprocess is folded into b1 at parameter-build time.)
    parts = [(e == c).astype(jnp.float32) for c in range(11)]
    x = jnp.concatenate(parts, axis=1).astype(jnp.bfloat16)    # (TB,176) bf16

    # conv0(1x4) + conv1(4x1) + ReLU + concat, folded into one matmul.
    z1 = jnp.dot(x, w1_ref[...], preferred_element_type=jnp.float32) + b1_ref[...]
    z1 = jnp.maximum(z1, 0.0).astype(jnp.bfloat16)             # (TB,128)
    # linear(80 -> 256) + ReLU (K padded to 128 with zero rows/bias).
    z2 = jnp.dot(z1, w2_ref[...], preferred_element_type=jnp.float32) + b2_ref[...]
    z2 = jnp.maximum(z2, 0.0).astype(jnp.bfloat16)             # (TB,256)
    # output(256 -> 4) and its [1,0,3,2]-permuted copy in one matmul:
    # lanes 0..3 hold straight logits, lanes 4..7 hold the swapped ones.
    out8 = jnp.dot(z2, w3_ref[...], preferred_element_type=jnp.float32) + b3_ref[...]

    # unscramble: per-lane select with mask [vert, vert, horiz, horiz].
    swap = flip_ref[...] != 0                                  # (TB,4) bool
    o_ref[...] = jnp.where(swap, out8[:, 4:8], out8[:, 0:4])


# --------------------------------------------------------------------------
# Plain-JAX glue: flip normalization + exponent extraction (matches torch)
# --------------------------------------------------------------------------
def preprocess(x):
    """Board -> (exponents (B,16) int32, swap mask (B,4) int32)."""
    xb = x.reshape(-1, 4, 4).astype(jnp.float32)
    corners = jnp.stack([xb[:, 0, 0], xb[:, 0, -1], xb[:, -1, 0], xb[:, -1, -1]], axis=1)
    ix = jnp.argmax(corners, axis=1)
    vert = (ix // 2) == 1
    horiz = (ix % 2) == 1
    xb = jnp.where(vert[:, None, None], xb[:, ::-1, :], xb)
    xb = jnp.where(horiz[:, None, None], xb[:, :, ::-1], xb)
    x_log = jnp.log2(xb + (xb == 0).astype(jnp.float32))
    exps = x_log.astype(jnp.int32).reshape(-1, 16)             # 0..10
    flips4 = jnp.stack([vert, vert, horiz, horiz], axis=1).astype(jnp.int32)
    return exps, flips4


# --------------------------------------------------------------------------
# Parameter setup: fold convs, pad lane dims to 128, cast matmul weights bf16
# --------------------------------------------------------------------------
def build_params():
    kp = jax.random.PRNGKey(42)
    k0, k1, k2, k3, k4, k5 = jax.random.split(kp, 6)
    fan_conv = 12 * 4 * 1
    bnd = 1.0 / np.sqrt(fan_conv)
    W0 = jax.random.uniform(k0, (10, 12, 1, 4), jnp.float32, -bnd, bnd)   # conv0 OIHW
    b0 = jax.random.uniform(k1, (10,), jnp.float32, -bnd, bnd)
    W1c = jax.random.uniform(k2, (10, 12, 4, 1), jnp.float32, -bnd, bnd)  # conv1 OIHW
    b1c = jax.random.uniform(k3, (10,), jnp.float32, -bnd, bnd)

    def xavier(key, shape):                                    # torch (out, in)
        fan_out, fan_in = shape
        b = float(np.sqrt(6.0 / (fan_in + fan_out)))
        return jax.random.uniform(key, shape, jnp.float32, -b, b)

    Wl = xavier(k4, (256, 80))
    bl = jnp.full((256,), 0.01, jnp.float32)
    Wo = xavier(k5, (4, 256))
    bo = jnp.full((4,), 0.01, jnp.float32)

    # Fold conv0/conv1 into one (192,80) matrix (input row index = ic*16 + r*4 + c,
    # output col layout matches torch's cat of zh.reshape(-1,40), zv.reshape(-1,40)).
    W0n, W1n = np.asarray(W0), np.asarray(W1c)
    Wbig = np.zeros((192, 80), np.float32)
    for oc in range(10):
        for ic in range(12):
            for r in range(4):
                for kw in range(4):
                    Wbig[ic * 16 + r * 4 + kw, oc * 4 + r] = W0n[oc, ic, 0, kw]
    for oc in range(10):
        for ic in range(12):
            for kh in range(4):
                for c in range(4):
                    Wbig[ic * 16 + kh * 4 + c, 40 + oc * 4 + c] = W1n[oc, ic, kh, 0]
    bbig = np.concatenate([np.repeat(np.asarray(b0), 4),
                           np.repeat(np.asarray(b1c), 4)]).astype(np.float32)

    # Channel 0 of the original preprocess is all ones -> fold its contribution
    # (column sum of rows 0..15) into the bias and drop those rows.  Pad the
    # 80-wide output dim to 128 lanes with zeros.
    W1k = np.zeros((176, 128), np.float32)
    W1k[:, :80] = Wbig[16:, :]
    b1k = np.zeros((1, 128), np.float32)
    b1k[0, :80] = bbig + Wbig[0:16, :].sum(axis=0)

    W2k = np.zeros((128, 256), np.float32)
    W2k[:80, :] = np.asarray(Wl).T
    b2k = np.asarray(bl, dtype=np.float32).reshape(1, 256)

    # Output weights + their column-permuted ([1,0,3,2]) copy; lane-padded to 128.
    W3t = np.asarray(Wo).T                                     # (256,4)
    W3k = np.zeros((256, 128), np.float32)
    W3k[:, 0:4] = W3t
    W3k[:, 4:8] = W3t[:, [1, 0, 3, 2]]
    b3k = np.zeros((1, 128), np.float32)
    b3k[0, 0:4] = np.asarray(bo)
    b3k[0, 4:8] = np.asarray(bo)[[1, 0, 3, 2]]

    kernel_params = (jnp.asarray(W1k, jnp.bfloat16), jnp.asarray(b1k, jnp.float32),
                     jnp.asarray(W2k, jnp.bfloat16), jnp.asarray(b2k, jnp.float32),
                     jnp.asarray(W3k, jnp.bfloat16), jnp.asarray(b3k, jnp.float32))
    raw_params = (W0, b0, W1c, b1c, Wl, bl, Wo, bo)
    return kernel_params, raw_params


# --------------------------------------------------------------------------
# Wrapper: preprocess glue + batch-tiled, weight-resident Pallas call
# --------------------------------------------------------------------------
def _round_up(n, m):
    return ((n + m - 1) // m) * m


def smartcnn_forward(x, kernel_params, block_rows=2048):
    W1, b1, W2, b2, W3, b3 = kernel_params
    exps, flips4 = preprocess(x)
    B = exps.shape[0]
    TB = min(block_rows, _round_up(B, 8))       # batch tile (multiple of 8)
    Bp = _round_up(B, TB)
    if Bp != B:
        pad = Bp - B
        exps = jnp.pad(exps, ((0, pad), (0, 0)))
        flips4 = jnp.pad(flips4, ((0, pad), (0, 0)))
    grid = (Bp // TB,)

    flops = 2 * Bp * (176 * 128 + 128 * 256 + 256 * 8)
    bytes_accessed = (Bp * (16 + 4 + 4) * 4
                      + 2 * (176 * 128 + 128 * 256 + 256 * 128)   # bf16 weights
                      + 4 * (128 + 256 + 128))                    # f32 biases

    out = pl.pallas_call(
        _smartcnn_kernel,
        out_shape=jax.ShapeDtypeStruct((Bp, 4), jnp.float32),
        grid=grid,
        in_specs=[
            pl.BlockSpec((TB, 16), lambda i: (i, 0)),      # exponents (tiled)
            pl.BlockSpec((TB, 4), lambda i: (i, 0)),       # swap mask (tiled)
            pl.BlockSpec((176, 128), lambda i: (0, 0)),    # folded conv weights (resident)
            pl.BlockSpec((1, 128), lambda i: (0, 0)),
            pl.BlockSpec((128, 256), lambda i: (0, 0)),    # linear (resident)
            pl.BlockSpec((1, 256), lambda i: (0, 0)),
            pl.BlockSpec((256, 128), lambda i: (0, 0)),    # output straight+swapped (resident)
            pl.BlockSpec((1, 128), lambda i: (0, 0)),
        ],
        out_specs=pl.BlockSpec((TB, 4), lambda i: (i, 0)),
        compiler_params=pltpu.CompilerParams(
            dimension_semantics=("parallel",),             # shard batch across TCs (v7x)
            vmem_limit_bytes=32 * 1024 * 1024,
        ),
        cost_estimate=pl.CostEstimate(flops=flops, transcendentals=0,
                                      bytes_accessed=bytes_accessed),
    )(exps, flips4, W1, b1, W2, b2, W3, b3)
    return out[:B]


# --------------------------------------------------------------------------
# Pure-JAX reference (direct f32 convs) used only to sanity-check the kernel
# --------------------------------------------------------------------------
def reference_forward(x, raw_params):
    W0, b0, W1c, b1c, Wl, bl, Wo, bo = raw_params
    exps, flips4 = preprocess(x)
    B = exps.shape[0]
    e = exps.reshape(B, 4, 4)
    onehot = jax.nn.one_hot(e, 11, dtype=jnp.float32)          # (B,4,4,11)
    Xn = jnp.zeros((B, 12, 4, 4), jnp.float32)
    Xn = Xn.at[:, 1:].set(jnp.transpose(onehot, (0, 3, 1, 2)))
    Xn = Xn.at[:, 0].set(jnp.sum(Xn[:, 1:], axis=1))           # all-ones mask channel
    dn = ('NCHW', 'OIHW', 'NCHW')
    zh = jax.nn.relu(jax.lax.conv_general_dilated(Xn, W0, (1, 1), 'VALID',
                                                  dimension_numbers=dn)
                     + b0[None, :, None, None])                # (B,10,4,1)
    zv = jax.nn.relu(jax.lax.conv_general_dilated(Xn, W1c, (1, 1), 'VALID',
                                                  dimension_numbers=dn)
                     + b1c[None, :, None, None])               # (B,10,1,4)
    z1 = jnp.concatenate([zh.reshape(-1, 40), zv.reshape(-1, 40)], axis=1)
    z2 = jax.nn.relu(z1 @ Wl.T + bl)
    out = z2 @ Wo.T + bo
    vert = flips4[:, 0:1] != 0
    horiz = flips4[:, 2:3] != 0
    o0, o1, o2, o3 = out[:, 0:1], out[:, 1:2], out[:, 2:3], out[:, 3:4]
    return jnp.concatenate([jnp.where(vert, o1, o0), jnp.where(vert, o0, o1),
                            jnp.where(horiz, o3, o2), jnp.where(horiz, o2, o3)], axis=1)


if __name__ == "__main__":
    B = 8
    key = jax.random.PRNGKey(0)
    # synthetic 2048 boards: exponent 0 -> empty tile, 1..10 -> tiles 2..1024
    exps_in = jax.random.randint(key, (B, 16), 0, 11)
    x = jnp.where(exps_in == 0, 0.0,
                  jnp.exp2(exps_in.astype(jnp.float32))).astype(jnp.float32)

    kernel_params, raw_params = build_params()
    fwd = jax.jit(lambda inp: smartcnn_forward(inp, kernel_params))
    out = fwd(x)
    jax.block_until_ready(out)

    ref = reference_forward(x, raw_params)
    assert out.shape == (B, 4)
    max_err = float(jnp.max(jnp.abs(out - ref)))
    # bf16 matmul operands (f32 accumulation) -> small numerical differences
    assert max_err < 3e-2, f"kernel mismatch vs reference, max abs err={max_err}"
    print("KERNEL_OK")
</pallas_src>

<mosaic_0001>
module attributes {stable_mosaic.version = 11 : i64} {
  func.func @_smartcnn_kernel(%arg0: i32, %arg1: memref<8x16xi32, #tpu.memory_space<vmem>>, %arg2: memref<8x4xi32, #tpu.memory_space<vmem>>, %arg3: memref<176x128xbf16, #tpu.memory_space<vmem>>, %arg4: memref<1x128xf32, #tpu.memory_space<vmem>>, %arg5: memref<128x256xbf16, #tpu.memory_space<vmem>>, %arg6: memref<1x256xf32, #tpu.memory_space<vmem>>, %arg7: memref<256x128xbf16, #tpu.memory_space<vmem>>, %arg8: memref<1x128xf32, #tpu.memory_space<vmem>>, %arg9: memref<8x4xf32, #tpu.memory_space<vmem>>) attributes {dimension_semantics = [#tpu.dimension_semantics<parallel>], iteration_bounds = array<i64: 1>, scalar_prefetch = 0 : i64, scratch_operands = 0 : i64, tpu.core_type = #tpu.core_type<tc>, window_params = [{transform_indices = @transform_0, window_bounds = array<i64: 8, 16>}, {transform_indices = @transform_1, window_bounds = array<i64: 8, 4>}, {pipeline_mode = #tpu.pipeline_mode<synchronous>, transform_indices = @transform_2, window_bounds = array<i64: 176, 128>}, {pipeline_mode = #tpu.pipeline_mode<synchronous>, transform_indices = @transform_3, window_bounds = array<i64: 1, 128>}, {pipeline_mode = #tpu.pipeline_mode<synchronous>, transform_indices = @transform_4, window_bounds = array<i64: 128, 256>}, {pipeline_mode = #tpu.pipeline_mode<synchronous>, transform_indices = @transform_5, window_bounds = array<i64: 1, 256>}, {pipeline_mode = #tpu.pipeline_mode<synchronous>, transform_indices = @transform_6, window_bounds = array<i64: 256, 128>}, {pipeline_mode = #tpu.pipeline_mode<synchronous>, transform_indices = @transform_7, window_bounds = array<i64: 1, 128>}, {transform_indices = @transform_8, window_bounds = array<i64: 8, 4>}]} {
    %c0 = arith.constant 0 : index
    %c0_0 = arith.constant 0 : index
    %0 = vector.load %arg1[%c0, %c0_0] : memref<8x16xi32, #tpu.memory_space<vmem>>, vector<8x16xi32>
    %c0_i32 = arith.constant 0 : i32
    %1 = vector.broadcast %c0_i32 : i32 to vector<8x16xi32>
    %2 = arith.cmpi eq, %0, %1 : vector<8x16xi32>
    %3 = arith.extui %2 : vector<8x16xi1> to vector<8x16xi32>
    %4 = arith.sitofp %3 : vector<8x16xi32> to vector<8x16xf32>
    %c1_i32 = arith.constant 1 : i32
    %5 = vector.broadcast %c1_i32 : i32 to vector<8x16xi32>
    %6 = arith.cmpi eq, %0, %5 : vector<8x16xi32>
    %7 = arith.extui %6 : vector<8x16xi1> to vector<8x16xi32>
    %8 = arith.sitofp %7 : vector<8x16xi32> to vector<8x16xf32>
    %c2_i32 = arith.constant 2 : i32
    %9 = vector.broadcast %c2_i32 : i32 to vector<8x16xi32>
    %10 = arith.cmpi eq, %0, %9 : vector<8x16xi32>
    %11 = arith.extui %10 : vector<8x16xi1> to vector<8x16xi32>
    %12 = arith.sitofp %11 : vector<8x16xi32> to vector<8x16xf32>
    %c3_i32 = arith.constant 3 : i32
    %13 = vector.broadcast %c3_i32 : i32 to vector<8x16xi32>
    %14 = arith.cmpi eq, %0, %13 : vector<8x16xi32>
    %15 = arith.extui %14 : vector<8x16xi1> to vector<8x16xi32>
    %16 = arith.sitofp %15 : vector<8x16xi32> to vector<8x16xf32>
    %c4_i32 = arith.constant 4 : i32
    %17 = vector.broadcast %c4_i32 : i32 to vector<8x16xi32>
    %18 = arith.cmpi eq, %0, %17 : vector<8x16xi32>
    %19 = arith.extui %18 : vector<8x16xi1> to vector<8x16xi32>
    %20 = arith.sitofp %19 : vector<8x16xi32> to vector<8x16xf32>
    %c5_i32 = arith.constant 5 : i32
    %21 = vector.broadcast %c5_i32 : i32 to vector<8x16xi32>
    %22 = arith.cmpi eq, %0, %21 : vector<8x16xi32>
    %23 = arith.extui %22 : vector<8x16xi1> to vector<8x16xi32>
    %24 = arith.sitofp %23 : vector<8x16xi32> to vector<8x16xf32>
    %c6_i32 = arith.constant 6 : i32
    %25 = vector.broadcast %c6_i32 : i32 to vector<8x16xi32>
    %26 = arith.cmpi eq, %0, %25 : vector<8x16xi32>
    %27 = arith.extui %26 : vector<8x16xi1> to vector<8x16xi32>
    %28 = arith.sitofp %27 : vector<8x16xi32> to vector<8x16xf32>
    %c7_i32 = arith.constant 7 : i32
    %29 = vector.broadcast %c7_i32 : i32 to vector<8x16xi32>
    %30 = arith.cmpi eq, %0, %29 : vector<8x16xi32>
    %31 = arith.extui %30 : vector<8x16xi1> to vector<8x16xi32>
    %32 = arith.sitofp %31 : vector<8x16xi32> to vector<8x16xf32>
    %c8_i32 = arith.constant 8 : i32
    %33 = vector.broadcast %c8_i32 : i32 to vector<8x16xi32>
    %34 = arith.cmpi eq, %0, %33 : vector<8x16xi32>
    %35 = arith.extui %34 : vector<8x16xi1> to vector<8x16xi32>
    %36 = arith.sitofp %35 : vector<8x16xi32> to vector<8x16xf32>
    %c9_i32 = arith.constant 9 : i32
    %37 = vector.broadcast %c9_i32 : i32 to vector<8x16xi32>
    %38 = arith.cmpi eq, %0, %37 : vector<8x16xi32>
    %39 = arith.extui %38 : vector<8x16xi1> to vector<8x16xi32>
    %40 = arith.sitofp %39 : vector<8x16xi32> to vector<8x16xf32>
    %c10_i32 = arith.constant 10 : i32
    %41 = vector.broadcast %c10_i32 : i32 to vector<8x16xi32>
    %42 = arith.cmpi eq, %0, %41 : vector<8x16xi32>
    %43 = arith.extui %42 : vector<8x16xi1> to vector<8x16xi32>
    %44 = arith.sitofp %43 : vector<8x16xi32> to vector<8x16xf32>
    %45 = tpu.concatenate %4, %8, %12, %16, %20, %24, %28, %32, %36, %40, %44 in 1 : vector<8x16xf32>, vector<8x16xf32>, vector<8x16xf32>, vector<8x16xf32>, vector<8x16xf32>, vector<8x16xf32>, vector<8x16xf32>, vector<8x16xf32>, vector<8x16xf32>, vector<8x16xf32>, vector<8x16xf32> -> vector<8x176xf32>
    %46 = arith.truncf %45 : vector<8x176xf32> to vector<8x176xbf16>
    %c0_1 = arith.constant 0 : index
    %c0_2 = arith.constant 0 : index
    %47 = vector.load %arg3[%c0_1, %c0_2] : memref<176x128xbf16, #tpu.memory_space<vmem>>, vector<176x128xbf16>
    %cst = arith.constant dense<0.000000e+00> : vector<8x128xf32>
    %48 = tpu.matmul %46, %47, %cst {dimension_numbers = #tpu.dot_dimension_numbers<[1], [0], [0], [1], [0, 0, 1, 1], [], []>} : vector<8x176xbf16>, vector<176x128xbf16>, vector<8x128xf32> -> vector<8x128xf32>
    %c0_3 = arith.constant 0 : index
    %c0_4 = arith.constant 0 : index
    %49 = vector.load %arg4[%c0_3, %c0_4] : memref<1x128xf32, #tpu.memory_space<vmem>>, vector<1x128xf32>
    %50 = vector.broadcast %49 : vector<1x128xf32> to vector<8x128xf32>
    %51 = arith.addf %48, %50 : vector<8x128xf32>
    %cst_5 = arith.constant 0.000000e+00 : f32
    %52 = vector.broadcast %cst_5 : f32 to vector<8x128xf32>
    %53 = arith.maximumf %51, %52 : vector<8x128xf32>
    %54 = arith.truncf %53 : vector<8x128xf32> to vector<8x128xbf16>
    %c0_6 = arith.constant 0 : index
    %c0_7 = arith.constant 0 : index
    %55 = vector.load %arg5[%c0_6, %c0_7] : memref<128x256xbf16, #tpu.memory_space<vmem>>, vector<128x256xbf16>
    %cst_8 = arith.constant dense<0.000000e+00> : vector<8x256xf32>
    %56 = tpu.matmul %54, %55, %cst_8 {dimension_numbers = #tpu.dot_dimension_numbers<[1], [0], [0], [1], [0, 0, 1, 1], [], []>} : vector<8x128xbf16>, vector<128x256xbf16>, vector<8x256xf32> -> vector<8x256xf32>
    %c0_9 = arith.constant 0 : index
    %c0_10 = arith.constant 0 : index
    %57 = vector.load %arg6[%c0_9, %c0_10] : memref<1x256xf32, #tpu.memory_space<vmem>>, vector<1x256xf32>
    %58 = vector.broadcast %57 : vector<1x256xf32> to vector<8x256xf32>
    %59 = arith.addf %56, %58 : vector<8x256xf32>
    %cst_11 = arith.constant 0.000000e+00 : f32
    %60 = vector.broadcast %cst_11 : f32 to vector<8x256xf32>
    %61 = arith.maximumf %59, %60 : vector<8x256xf32>
    %62 = arith.truncf %61 : vector<8x256xf32> to vector<8x256xbf16>
    %c0_12 = arith.constant 0 : index
    %c0_13 = arith.constant 0 : index
    %63 = vector.load %arg7[%c0_12, %c0_13] : memref<256x128xbf16, #tpu.memory_space<vmem>>, vector<256x128xbf16>
    %cst_14 = arith.constant dense<0.000000e+00> : vector<8x128xf32>
    %64 = tpu.matmul %62, %63, %cst_14 {dimension_numbers = #tpu.dot_dimension_numbers<[1], [0], [0], [1], [0, 0, 1, 1], [], []>} : vector<8x256xbf16>, vector<256x128xbf16>, vector<8x128xf32> -> vector<8x128xf32>
    %c0_15 = arith.constant 0 : index
    %c0_16 = arith.constant 0 : index
    %65 = vector.load %arg8[%c0_15, %c0_16] : memref<1x128xf32, #tpu.memory_space<vmem>>, vector<1x128xf32>
    %66 = vector.broadcast %65 : vector<1x128xf32> to vector<8x128xf32>
    %67 = arith.addf %64, %66 : vector<8x128xf32>
    %c0_17 = arith.constant 0 : index
    %c0_18 = arith.constant 0 : index
    %68 = vector.load %arg2[%c0_17, %c0_18] : memref<8x4xi32, #tpu.memory_space<vmem>>, vector<8x4xi32>
    %c0_i32_19 = arith.constant 0 : i32
    %69 = vector.broadcast %c0_i32_19 : i32 to vector<8x4xi32>
    %70 = arith.cmpi ne, %68, %69 : vector<8x4xi32>
    %71 = vector.extract_strided_slice %67 {offsets = [0, 4], sizes = [8, 4], strides = [1, 1]} : vector<8x128xf32> to vector<8x4xf32>
    %72 = vector.extract_strided_slice %67 {offsets = [0, 0], sizes = [8, 4], strides = [1, 1]} : vector<8x128xf32> to vector<8x4xf32>
    %73 = arith.select %70, %71, %72 : vector<8x4xi1>, vector<8x4xf32>
    %c0_20 = arith.constant 0 : index
    %c0_21 = arith.constant 0 : index
    %74 = vector.load %arg9[%c0_20, %c0_21] : memref<8x4xf32, #tpu.memory_space<vmem>>, vector<8x4xf32>
    tpu.vector_store %arg9[%c0_20, %c0_21], %73 {strides = array<i32>} : memref<8x4xf32, #tpu.memory_space<vmem>>, vector<8x4xf32>,
    return
  }
  func.func @transform_0(%arg0: i32) -> (i32, i32) {
    %c0_i32 = arith.constant 0 : i32
    %c0_i32_0 = arith.constant 0 : i32
    return %arg0, %c0_i32 : i32, i32
  }
  func.func @transform_1(%arg0: i32) -> (i32, i32) {
    %c0_i32 = arith.constant 0 : i32
    %c0_i32_0 = arith.constant 0 : i32
    return %arg0, %c0_i32 : i32, i32
  }
  func.func @transform_2(%arg0: i32) -> (i32, i32) {
    %c0_i32 = arith.constant 0 : i32
    %c0_i32_0 = arith.constant 0 : i32
    %c0_i32_1 = arith.constant 0 : i32
    return %c0_i32, %c0_i32_0 : i32, i32
  }
  func.func @transform_3(%arg0: i32) -> (i32, i32) {
    %c0_i32 = arith.constant 0 : i32
    %c0_i32_0 = arith.constant 0 : i32
    %c0_i32_1 = arith.constant 0 : i32
    return %c0_i32, %c0_i32_0 : i32, i32
  }
  func.func @transform_4(%arg0: i32) -> (i32, i32) {
    %c0_i32 = arith.constant 0 : i32
    %c0_i32_0 = arith.constant 0 : i32
    %c0_i32_1 = arith.constant 0 : i32
    return %c0_i32, %c0_i32_0 : i32, i32
  }
  func.func @transform_5(%arg0: i32) -> (i32, i32) {
    %c0_i32 = arith.constant 0 : i32
    %c0_i32_0 = arith.constant 0 : i32
    %c0_i32_1 = arith.constant 0 : i32
    return %c0_i32, %c0_i32_0 : i32, i32
  }
  func.func @transform_6(%arg0: i32) -> (i32, i32) {
    %c0_i32 = arith.constant 0 : i32
    %c0_i32_0 = arith.constant 0 : i32
    %c0_i32_1 = arith.constant 0 : i32
    return %c0_i32, %c0_i32_0 : i32, i32
  }
  func.func @transform_7(%arg0: i32) -> (i32, i32) {
    %c0_i32 = arith.constant 0 : i32
    %c0_i32_0 = arith.constant 0 : i32
    %c0_i32_1 = arith.constant 0 : i32
    return %c0_i32, %c0_i32_0 : i32, i32
  }
  func.func @transform_8(%arg0: i32) -> (i32, i32) {
    %c0_i32 = arith.constant 0 : i32
    %c0_i32_0 = arith.constant 0 : i32
    return %arg0, %c0_i32 : i32, i32
  }
}

</mosaic_0001>

<bundles_post_ra>
// kernel: _lambda_.1
= control target key start
LH: loop header
LB: loop body
LE: loop exit
PB: predicated region body
PF: predicated region fallthrough
CT: control target
= control target key end

     0   :  { %13 = vsyncpa [#allocation3], 0  ;;  %s783_s27 = smov [#allocation2]   ;;  %s969_s0 = inlined_call_operand.vmem [shape: s32[8,16], index: 0, kind: input, shape index: {}]   ;;  %s970_s1 = inlined_call_operand.vmem [shape: s32[8,4], index: 1, kind: input, shape index: {}]   ;;  %s971_s2 = inlined_call_operand.vmem [shape: bf16[176,128], index: 2, kind: input, shape index: {}]   ;;  %s972_s3 = inlined_call_operand.vmem [shape: f32[1,128], index: 3, kind: input, shape index: {}]   ;;  %s973_s4 = inlined_call_operand.vmem [shape: bf16[128,256], index: 4, kind: input, shape index: {}]   ;;  %s974_s5 = inlined_call_operand.vmem [shape: f32[1,256], index: 5, kind: input, shape index: {}]   ;;  %s975_s6 = inlined_call_operand.hbm [shape: bf16[256,128], index: 6, kind: input, shape index: {}]   ;;  %s976_s7 = inlined_call_operand.vmem [shape: f32[1,128], index: 7, kind: input, shape index: {}]   ;;  %s977_s8 = inlined_call_operand.vmem [shape: f32[8,4], index: 8, kind: output, shape index: {}]  }
   0x1   :  { %s31_s28 = sshll.u32 %s783_s27, 4  ;;  %s32_s28 = int_to_ptr.vmem [resolvable:$true] %s31_s28 }
   0x2   :  { %s769_s29 = scalar_lea.vmem %s32_s28, 2048  ;;  %p774_p1 = scmp.lt.s32.totalorder %s32_s28, %s32_s28 }
   0x3   :  { %p770_p0 = scmp.ne.s32.totalorder %s32_s28, %s769_s29  ;;  %p775_p2 = scmp.lt.s32.totalorder %s769_s29, %s769_s29 }
   0x5   :  { %p776_p3 = por %p775_p2, %p774_p1 }
   0x7   :  { %p777_p4 = pnand %p776_p3, %p770_p0 }
   0x9   :  { %780 = shalt.err (!%p777_p4)
}
   0xa   :  { %s784_s30 = smov 64   ;;  %s785_s9 = smov 4  }
   0xb   :  { %37 = dma.hbm_to_vmem [thread:$0]  %s975_s6, 2048, %s32_s28, [#allocation3], %s784_s30, %s784_s30, %s785_s9  }
   0xc   :  { %781 = dma.done.wait [#allocation3], 2048  }
   0xd   :  { %782 = vsyncadd [#allocation3], 4294965248  ;;  %v786_v0 = vmov 0   ;;  %v44_v1 = vld [vmem:[%s969_s0] sm:$0xff]  ;;  %v710_v2 = vld [vmem:[%s971_s2 + $0x38] sm:$0xff]   ;;  %v787_v3 = vmov 0.0  }
   0xe   :  { %230 = vmatprep.subr.bf16.mxu0 %v786_v0  ;;  %412 = vmatprep.mubr.bf16.mxu1 %v786_v0  ;;  %vm54_vm0 = vcmp.eq.s32.totalorder %v44_v1, 3  ;;  %vm48_vm1 = vcmp.eq.s32.totalorder %v44_v1, 1  ;;  %vm72_vm2 = vcmp.eq.s32.totalorder %v44_v1, 9  ;;  %vm57_vm3 = vcmp.eq.s32.totalorder %v44_v1, 4  ;;  %s788_s6 = smov 48   ;;  %v711_v8 = vld [vmem:[%s971_s2 + $0x30] sm:$0xff]  }
   0xf   :  { %v617_v4 = vsel %vm54_vm0, 1.0, %v787_v3  ;;  %v615_v5 = vsel %vm48_vm1, 1.0, %v787_v3  ;;  %v623_v6 = vsel %vm72_vm2, 1.0, %v787_v3  ;;  %vm51_vm4 = vcmp.eq.s32.totalorder %v44_v1, 2  ;;  %231 = vmatpush1.bf16.msra.mxu0 %v710_v2  ;;  %s789_s0 = smov 16   ;;  %v712_v11 = vld [vmem:[%s971_s2 + $0x28] sm:$0xff]  }
  0x10   :  { %87 = vrot.lane.b32.xlu1 %v617_v4, %s788_s6  ;;  %v705_v7 = vpack.i.bf16 %v623_v6, %v615_v5  ;;  %v618_v9 = vsel %vm57_vm3, 1.0, %v787_v3  ;;  %232 = vmatprep.subr.bf16.mxu0 %v786_v0  ;;  %vm63_vm5 = vcmp.eq.s32.totalorder %v44_v1, 6  ;;  %v616_v10 = vsel %vm51_vm4, 1.0, %v787_v3  ;;  %s790_s20 = smov 32   ;;  %s791_s21 = smov 96   ;;  %v713_v16 = vld [vmem:[%s971_s2 + $0x20] sm:$0xff]  }
  0x11   :  { %vm60_vm6 = vcmp.eq.s32.totalorder %v44_v1, 5  ;;  %vm45_vm7 = vcmp.eq.s32.totalorder %v44_v1, 0  ;;  %v620_v12 = vsel %vm63_vm5, 1.0, %v787_v3  ;;  %vm66_vm8 = vcmp.eq.s32.totalorder %v44_v1, 7  ;;  %s792_s24 = smov 80   ;;  %v714_v18 = vld [vmem:[%s971_s2 + $0x18] sm:$0xff]  }
  0x12   :  { %706 = vrot.lane.b32.xlu0 %v705_v7, %s789_s0  ;;  %v862_v13 = vsel %vm45_vm7, 1.0, %v787_v3  ;;  %vm69_vm9 = vcmp.eq.s32.totalorder %v44_v1, 8  ;;  %v619_v14 = vsel %vm60_vm6, 1.0, %v787_v3  ;;  %vm75_vm10 = vcmp.eq.s32.totalorder %v44_v1, 10  ;;  %v721_v20 = vld [vmem:[%s973_s4 + $0x74] ss:$8 sps:$4 sm:$0xff]  }
  0x13   :  { %233 = vmatpush1.bf16.msra.mxu0 %v711_v8  ;;  %v864_v15 = vsel %vm69_vm9, 1.0, %v787_v3  ;;  %v621_v17 = vsel %vm66_vm8, 1.0, %v787_v3  ;;  %v624_v19 = vsel %vm75_vm10, 1.0, %v787_v3  ;;  %v723_v21 = vld [vmem:[%s973_s4 + $0x70] ss:$8 sps:$4 sm:$0xff]   ;;  %s793_s9 = smov 112   ;;  %380 = vmatprep.subr.bf16.mxu1 %v721_v20 }
  0x14   :  { %91 = vrot.lane.b32.xlu1 %v618_v9, %s784_s30  ;;  %234 = vmatprep.subr.bf16.mxu0 %v786_v0  ;;  %v724_v22 = vld [vmem:[%s973_s4 + $0x64] ss:$8 sps:$4 sm:$0xff]   ;;  %v726_v23 = vld [vmem:[%s973_s4 + $0x60] ss:$8 sps:$4 sm:$0xff]   ;;  %v727_v24 = vld [vmem:[%s973_s4 + $0x54] ss:$8 sps:$4 sm:$0xff]  }
  0x15   :  { %381 = vmatpush1.bf16.msra.mxu1 %v723_v21  ;;  %v715_v25 = vld [vmem:[%s971_s2 + $0x10] sm:$0xff]   ;;  %v716_v27 = vld [vmem:[%s971_s2 + $0x8] sm:$0xff]   ;;  %v717_v31 = vld [vmem:[%s971_s2] sm:$0xff]   ;;  %vm114_vm11 = vcmask 130048   ;;  %vm116_vm12 = vcmask 261120   ;;  %vm118_vm13 = vcmask 392192  }
  0x16   :  { %83 = vrot.lane.b32.xlu0 %v616_v10, %s790_s20  ;;  %382 = vmatprep.subr.bf16.mxu1 %v724_v22  ;;  %v729_v26 = vld [vmem:[%s973_s4 + $0x50] ss:$8 sps:$4 sm:$0xff]   ;;  %v730_v28 = vld [vmem:[%s973_s4 + $0x44] ss:$8 sps:$4 sm:$0xff]   ;;  %v732_v29 = vld [vmem:[%s973_s4 + $0x40] ss:$8 sps:$4 sm:$0xff]  }
  0x17   :  { %235 = vmatpush1.bf16.msra.mxu0 %v712_v11  ;;  %v733_v30 = vld [vmem:[%s973_s4 + $0x34] ss:$8 sps:$4 sm:$0xff]   ;;  %v735_v32 = vld [vmem:[%s973_s4 + $0x30] ss:$8 sps:$4 sm:$0xff]   ;;  %v736_v33 = vld [vmem:[%s973_s4 + $0x24] ss:$8 sps:$4 sm:$0xff]  }
  0x18   :  { %99 = vrot.lane.b32.xlu1 %v620_v12, %s791_s21  ;;  %236 = vmatprep.subr.bf16.mxu0 %v786_v0  ;;  %v718_v34 = vld [vmem:[%s971_s2 + $0x50] sm:$0xff]   ;;  %v738_v35 = vld [vmem:[%s973_s4 + $0x20] ss:$8 sps:$4 sm:$0xff]   ;;  %vm120_vm14 = vcmask 523264   ;;  %vm122_vm15 = vcmask 654336   ;;  %vm124_vm0 = vcmask 785408  }
  0x19   :  { %383 = vmatpush1.bf16.msra.mxu1 %v726_v23  ;;  %v739_v36 = vld [vmem:[%s973_s4 + $0x14] ss:$8 sps:$4 sm:$0xff]   ;;  %v719_v37 = vld [vmem:[%s971_s2 + $0x48] sm:$0xff]   ;;  %v720_v38 = vld [vmem:[%s971_s2 + $0x40] sm:$0xff]   ;;  %vm126_vm1 = vcmask 916480   ;;  %v290_v23 = vlaneseq  ;;  %vm607_vm3 = vcmask 31744  }
  0x1a   :  { %95 = vrot.lane.b32.xlu0 %v619_v14, %s792_s24  ;;  %384 = vmatprep.subr.bf16.mxu1 %v727_v24  ;;  %v741_v60 = vld [vmem:[%s973_s4 + $0x10] ss:$8 sps:$4 sm:$0xff]   ;;  %v742_v61 = vld [vmem:[%s973_s4 + $0x4] ss:$8 sps:$4 sm:$0xff]   ;;  %v744_v62 = vld [vmem:[%s973_s4] ss:$8 sps:$4 sm:$0xff]  }
  0x1b   :  { %237 = vmatpush1.bf16.msra.mxu0 %v713_v16  ;;  %v745_v63 = vld [vmem:[#allocation2 + $0x78] sm:$0xff]   ;;  %v747_v8 = vld [vmem:[#allocation2 + $0x70] sm:$0xff]   ;;  %v749_v11 = vld [vmem:[#allocation2 + $0x68] sm:$0xff]   ;;  %v291_v24 = vshrl.u32 %v290_v23, 7 }
  0x1c   :  { %103 = vrot.lane.b32.xlu1 %v621_v17, %s793_s9  ;;  %238 = vmatprep.subr.bf16.mxu0 %v786_v0  ;;  %v746_v6 = vld [vmem:[#allocation2 + $0x38] sm:$0xff]   ;;  %v748_v10 = vld [vmem:[#allocation2 + $0x30] sm:$0xff]   ;;  %v750_v12 = vld [vmem:[#allocation2 + $0x28] sm:$0xff]  }
  0x1d   :  { %385 = vmatpush1.bf16.msra.mxu1 %v729_v26  ;;  %v752_v14 = vld [vmem:[#allocation2 + $0x20] sm:$0xff]   ;;  %v754_v16 = vld [vmem:[#allocation2 + $0x18] sm:$0xff]   ;;  %v755_v17 = vld [vmem:[#allocation2 + $0x50] sm:$0xff]  }
  0x1e   :  { %111 = vrot.lane.b32.xlu0 %v624_v19, %s790_s20  ;;  %386 = vmatprep.subr.bf16.mxu1 %v730_v28  ;;  %v757_v19 = vld [vmem:[#allocation2 + $0x48] sm:$0xff]   ;;  %v759_v21 = vld [vmem:[#allocation2 + $0x40] sm:$0xff]  }
  0x1f   :  { %239 = vmatpush1.bf16.msra.mxu0 %v714_v18  ;;  %v756_v18 = vld [vmem:[#allocation2 + $0x10] sm:$0xff]   ;;  %v758_v20 = vld [vmem:[#allocation2 + $0x8] sm:$0xff]   ;;  %v760_v22 = vld [vmem:[#allocation2] sm:$0xff]  }
  0x20   :  { %240 = vmatprep.subr.bf16.mxu0 %v786_v0  ;;  %v288_v26 = vld [vmem:[%s974_s5] sm:$0x3]  ;;  %s794_s5 = smov 124  }
  0x21   :  { %387 = vmatpush1.bf16.msra.mxu1 %v732_v29 }
  0x22   :  { %388 = vmatprep.subr.bf16.mxu1 %v733_v30 }
  0x23   :  { %241 = vmatpush1.bf16.msra.mxu0 %v715_v25  ;;  %v292_v25 = vsub.s32 0, %v291_v24 }
  0x24   :  { %242 = vmatprep.subr.bf16.mxu0 %v786_v0 }
  0x25   :  { %389 = vmatpush1.bf16.msra.mxu1 %v735_v32  ;;  %v293_v28 = vrot.slane %v288_v26, %v292_v25 }
  0x26   :  { %390 = vmatprep.subr.bf16.mxu1 %v736_v33 }
  0x27   :  { %243 = vmatpush1.bf16.msra.mxu0 %v716_v27  ;;  %v296_v27 = vsub.s32 1, %v291_v24 }
  0x28   :  { %244 = vmatprep.subr.bf16.mxu0 %v786_v0 }
  0x29   :  { %391 = vmatpush1.bf16.msra.mxu1 %v738_v35  ;;  %v297_v29 = vrot.slane %v288_v26, %v296_v27 }
  0x2a   :  { %392 = vmatprep.subr.bf16.mxu1 %v739_v36 }
  0x2b   :  { %245 = vmatpush1.bf16.msra.mxu0 %v717_v31 }
  0x2c   :  { %256 = vmatprep.subr.bf16.mxu0 %v786_v0 }
  0x2d   :  { %393 = vmatpush1.bf16.msra.mxu1 %v741_v60 }
  0x2e   :  { %394 = vmatprep.subr.bf16.mxu1 %v742_v61 }
  0x2f   :  { %257 = vmatpush2.bf16.msra.mxu0 %v718_v34 }
  0x30   :  { %258 = vmatprep.subr.bf16.mxu0 %v786_v0 }
  0x31   :  { %395 = vmatpush1.bf16.msra.mxu1 %v744_v62 }
  0x32   :  { %671 = vmatprep.subr.bf16.mxu1 %v745_v63 }
  0x33   :  { %259 = vmatpush2.bf16.msra.mxu0 %v719_v37 }
  0x34   :  { %260 = vmatprep.subr.bf16.mxu0 %v786_v0  ;;  %v625_v0 = vld [vmem:[%s972_s3] ss:$0 sm:$0xff] }
  0x37   :  { %261 = vmatpush2.bf16.msra.mxu0 %v720_v38 }
  0x82   :  { %v88_v39 = vpop.permute.xlu1 %87 }
  0x84   :  { %v707_v40 = vpop.permute.xlu0 %706 }
  0x85   :  { %v708_v41 = vunpack.i.l.bf16 %v707_v40  ;;  %v709_v49 = vunpack.i.h.bf16 %v707_v40 }
  0x86   :  { %v92_v42 = vpop.permute.xlu1 %91 }
  0x87   :  { %v115_v43 = vsel %vm114_vm11, %v862_v13, %v708_v41  ;;  %v128_v55 = vsel %vm114_vm11, %v864_v15, %v709_v49  ;;  %v751_v13 = vld [vmem:[#allocation2 + $0x60] sm:$0xff]   ;;  %v753_v15 = vld [vmem:[#allocation2 + $0x58] sm:$0xff]  }
  0x88   :  { %v84_v44 = vpop.permute.xlu0 %83  ;;  %v654_v41 = vld [vmem:[%s976_s7] ss:$0 sm:$0xff] }
  0x89   :  { %v117_v45 = vsel %vm116_vm12, %v115_v43, %v84_v44 }
  0x8a   :  { %v100_v46 = vpop.permute.xlu1 %99  ;;  %v119_v47 = vsel %vm118_vm13, %v117_v45, %v88_v39 }
  0x8b   :  { %v121_v48 = vsel %vm120_vm14, %v119_v47, %v92_v42  ;;  %v600_v47 = vld [vmem:[%s970_s1] sm:$0xff] }
  0x8c   :  { %v96_v50 = vpop.permute.xlu0 %95  ;;  %vm601_vm2 = vcmp.ne.s32.totalorder %v600_v47, 0 }
  0x8d   :  { %v123_v51 = vsel %vm122_vm15, %v121_v48, %v96_v50 }
  0x8e   :  { %v104_v52 = vpop.permute.xlu1 %103  ;;  %v125_v53 = vsel %vm124_vm0, %v123_v51, %v100_v46 }
  0x8f   :  { %v127_v56 = vsel %vm126_vm1, %v125_v53, %v104_v52 }
  0x90   :  { %v112_v54 = vpop.permute.xlu0 %111  ;;  %v130_v59 = vpack.c.bf16 %v127_v56, %v127_v56 }
  0x91   :  { %v129_v57 = vsel %vm116_vm12, %v128_v55, %v112_v54 }
  0x92   :  { %v131_v58 = vpack.c.bf16 %v129_v57, %v129_v57 }
  0x94   :  { %637 = vmatprep.mubr.msk.bf16.mxu0 %vm118_vm13, %v131_v58 }
  0x95   :  { %263 = vmatmul.mubr.bf16.vlgmr.msra.gmra.mxu0 %v130_v59 }
 0x155   :  { %v264_v1 = vpop.f32.mrf.mxu0 }
 0x156   :  { %v265_v2 = vadd.f32 %v625_v0, %v264_v1 }
 0x157   :  { %v266_v3 = vpop.f32.mrf.mxu0 }
 0x158   :  { %v270_v4 = vmax.f32 %v265_v2, 0.0 }
 0x159   :  { %v267_v5 = vpop.f32.mrf.mxu0 }
 0x15a   :  { %v271_v7 = vpack.c.bf16 %v270_v4, %v270_v4 }
 0x15b   :  { %v268_v9 = vpop.f32.mrf.mxu0 }
 0x15c   :  { %413 = vmatmul.mubr.bf16.vlgmr.msra.gmra.mxu1 %v271_v7 }
 0x15d   :  { %672 = vmatpush3.bf16.msra.mxu1 %v746_v6 }
 0x15e   :  { %673 = vmatprep.subr.bf16.mxu1 %v747_v8 }
 0x161   :  { %674 = vmatpush3.bf16.msra.mxu1 %v748_v10 }
 0x162   :  { %675 = vmatprep.subr.bf16.mxu1 %v749_v11 }
 0x165   :  { %676 = vmatpush3.bf16.msra.mxu1 %v750_v12 }
 0x166   :  { %677 = vmatprep.subr.bf16.mxu1 %v751_v13 }
 0x169   :  { %678 = vmatpush3.bf16.msra.mxu1 %v752_v14 }
 0x16a   :  { %679 = vmatprep.subr.bf16.mxu1 %v753_v15 }
 0x16d   :  { %680 = vmatpush3.bf16.msra.mxu1 %v754_v16 }
 0x16e   :  { %681 = vmatprep.subr.bf16.mxu1 %v755_v17 }
 0x171   :  { %682 = vmatpush3.bf16.msra.mxu1 %v756_v18 }
 0x172   :  { %683 = vmatprep.subr.bf16.mxu1 %v757_v19 }
 0x175   :  { %684 = vmatpush3.bf16.msra.mxu1 %v758_v20 }
 0x176   :  { %685 = vmatprep.subr.bf16.mxu1 %v759_v21 }
 0x179   :  { %686 = vmatpush3.bf16.msra.mxu1 %v760_v22 }
 0x21c   :  { %v414_v30 = vpop.f32.mrf.mxu1 }
 0x21d   :  { %v415_v31 = vadd.f32 %v414_v30, %v293_v28 }
 0x21e   :  { %v416_v32 = vpop.f32.mrf.mxu1 }
 0x21f   :  { %v417_v33 = vadd.f32 %v416_v32, %v297_v29  ;;  %v421_v34 = vmax.f32 %v415_v31, 0.0 }
 0x220   :  { %v418_v35 = vpop.f32.mrf.mxu1 }
 0x221   :  { %v422_v36 = vmax.f32 %v417_v33, 0.0  ;;  %v423_v39 = vpack.c.bf16 %v421_v34, %v421_v34 }
 0x222   :  { %v419_v37 = vpop.f32.mrf.mxu1 }
 0x223   :  { %v424_v38 = vpack.c.bf16 %v422_v36, %v422_v36 }
 0x225   :  { %592 = vmatprep.mubr.bf16.mxu1 %v424_v38 }
 0x226   :  { %593 = vmatmul.mubr.bf16.vlgmr.msra.gmra.mxu1 %v423_v39 }
 0x2e6   :  { %v687_v40 = vpop.f32.mrf.mxu1 }
 0x2e8   :  { %v688_v42 = vpop.f32.mrf.mxu1 }
 0x2e9   :  { %v689_v43 = vadd.f32 %v688_v42, %v687_v40 }
 0x2ea   :  { %v690_v44 = vpop.f32.mrf.mxu1 }
 0x2eb   :  { %v595_v45 = vadd.f32 %v689_v43, %v654_v41 }
 0x2ec   :  { %v691_v46 = vpop.f32.mrf.mxu1 }
 0x2ed   :  { %603 = vrot.lane.b32.xlu0 %v595_v45, %s794_s5 }
 0x35f   :  { %v604_v48 = vpop.permute.xlu0 %603 }
 0x360   :  { %v606_v49 = vsel %vm601_vm2, %v604_v48, %v595_v45 }
 0x361   :  { %608 = vst.msk [vmem:[%s977_s8] sm:$0xff] %vm607_vm3, %v606_v49 }
 0x362   :  { %613 = vsyncpa [#allocation3], 1 }

</bundles_post_ra>
